<compile_context>
chip_gen: v7x
topology: tpu7x:2x2x1
jax: 0.10.0
libtpu: 0.0.40
codegen_flags: <defaults>
</compile_context>

<pallas_src>
import jax
import jax.numpy as jnp
from jax.experimental import pallas as pl
from jax.experimental.pallas import tpu as pltpu

_MiB = 1024 * 1024


def _ceil8(x):
    return ((x + 7) // 8) * 8


def _transition_kernel(xr_ref, xi_ref, wr_ref, wi_ref, yr_ref, yi_ref):
    # Blocks:
    #   xr_ref, xi_ref : (Nb, C, thw)      activations, channels-first
    #   wr_ref, wi_ref : (Cout, C)         1x1 conv weights (real / imag)
    #   yr_ref, yi_ref : (Nb, Cout, thw)   outputs, channels-first
    wr = wr_ref[...]
    wi = wi_ref[...]
    nb = xr_ref.shape[0]                     # static block size
    for n in range(nb):                      # static, small unrolled loop
        ar = jnp.maximum(xr_ref[n], 0.0)     # (C, thw)   complex_relu (real part)
        ai = jnp.maximum(xi_ref[n], 0.0)     # (C, thw)   complex_relu (imag part)
        # Complex 1x1 conv, written directly into the output refs (no temporaries):
        #   yr = wr @ ar - wi @ ai ;  yi = wr @ ai + wi @ ar
        yr_ref[n] = (jnp.dot(wr, ar, preferred_element_type=jnp.float32)
                     - jnp.dot(wi, ai, preferred_element_type=jnp.float32)
                     ).astype(yr_ref.dtype)
        yi_ref[n] = (jnp.dot(wr, ai, preferred_element_type=jnp.float32)
                     + jnp.dot(wi, ar, preferred_element_type=jnp.float32)
                     ).astype(yi_ref.dtype)


def transition_forward(xr, xi, wr, wi, *, vmem_budget_bytes=None):
    """Complex ReLU + complex 1x1 conv (Transition.forward).

    xr, xi : (N, C, H, W) float32       (NCHW, PyTorch convention)
    wr, wi : (Cout, C, 1, 1) float32    (PyTorch Conv2d weight layout)
    returns (yr, yi) : (N, Cout, H, W)
    """
    N, C, H, W = xr.shape
    Cout = wr.shape[0]
    HW = H * W

    # Pure reshapes (no data movement).
    wr2 = wr.reshape(Cout, C)
    wi2 = wi.reshape(Cout, C)
    xr3 = xr.reshape(N, C, HW)
    xi3 = xi.reshape(N, C, HW)

    # Pad the flattened spatial axis to a multiple of 128 so all tiles are lane-dense
    # (unmasked vst); the zero padding is inert through ReLU + linear conv and sliced off.
    HW_pad = pl.cdiv(HW, 128) * 128
    if HW_pad != HW:
        pad = HW_pad - HW
        xr3 = jnp.pad(xr3, ((0, 0), (0, 0), (0, pad)))
        xi3 = jnp.pad(xi3, ((0, 0), (0, 0), (0, pad)))

    # ---- VMEM-budget-driven tile sizing -------------------------------------------
    try:
        vmem_cap = int(pltpu.get_tpu_info().vmem_capacity_bytes)
    except Exception:
        vmem_cap = 64 * _MiB                 # conservative (v7x per-TensorCore VMEM)
    if vmem_budget_bytes is None:
        # Leave ~16 MiB headroom for compiler scratch; never assume more than ~100 MiB
        # even on 128 MiB parts (v5e/v6e).  On v7x this yields ~48 MiB of working set.
        vmem_budget_bytes = max(8 * _MiB, min(vmem_cap - 16 * _MiB, 100 * _MiB))

    # Double-buffered working-set bytes per lane of tile, per image:
    #   f32 * 2 buffers * (re + im) * (input sublanes + output sublanes)
    bytes_per_lane = 4 * 2 * 2 * (_ceil8(C) + _ceil8(Cout))
    max_lanes = max(512, vmem_budget_bytes // bytes_per_lane)
    max_lanes = (max_lanes // 128) * 128

    if max_lanes >= HW_pad:
        thw = HW_pad
    else:
        m = HW_pad // 128
        cap = max(1, max_lanes // 128)
        d = min(cap, m)
        while m % d != 0:                    # prefer an exact divisor (no edge tile)
            d -= 1
        if d * 128 >= max(512, (cap * 128) // 4):
            thw = d * 128
        else:
            thw = cap * 128                  # accept one masked edge tile over tiny tiles

    hw_tiles = pl.cdiv(HW_pad, thw)

    # Fold several images per grid step when each step would otherwise be tiny
    # (amortizes ~0.35 us/step), but keep >= 2 parallel steps for v7x megacore balance.
    per_batch_bytes = bytes_per_lane * thw
    if hw_tiles == 1 and N > 1:
        nb_cap = max(1, vmem_budget_bytes // per_batch_bytes)
        nb = min(nb_cap, max(1, N // 2))
        while N % nb != 0:
            nb -= 1
    else:
        nb = 1

    grid = (N // nb, hw_tiles)

    # Explicit VMEM limit: enough for the working set + scratch, below physical VMEM.
    vmem_limit = int(min(vmem_cap - 2 * _MiB,
                         max(nb * per_batch_bytes + 16 * _MiB, 32 * _MiB)))

    grid_spec = pltpu.PrefetchScalarGridSpec(
        num_scalar_prefetch=0,
        grid=grid,
        in_specs=[
            pl.BlockSpec((nb, C, thw), lambda b, j: (b, 0, j)),
            pl.BlockSpec((nb, C, thw), lambda b, j: (b, 0, j)),
            pl.BlockSpec((Cout, C), lambda b, j: (0, 0)),
            pl.BlockSpec((Cout, C), lambda b, j: (0, 0)),
        ],
        out_specs=(
            pl.BlockSpec((nb, Cout, thw), lambda b, j: (b, 0, j)),
            pl.BlockSpec((nb, Cout, thw), lambda b, j: (b, 0, j)),
        ),
    )

    # Advisory cost: HBM-streaming kernel (helps XLA overlap neighbors).
    cost = pl.CostEstimate(
        flops=8 * N * HW * Cout * C,
        transcendentals=0,
        bytes_accessed=4 * 2 * N * HW * (C + Cout),
    )

    yr3, yi3 = pl.pallas_call(
        _transition_kernel,
        out_shape=(
            jax.ShapeDtypeStruct((N, Cout, HW_pad), xr.dtype),
            jax.ShapeDtypeStruct((N, Cout, HW_pad), xi.dtype),
        ),
        grid_spec=grid_spec,
        compiler_params=pltpu.CompilerParams(
            dimension_semantics=("parallel", "parallel"),
            vmem_limit_bytes=vmem_limit,
        ),
        cost_estimate=cost,
    )(xr3, xi3, wr2, wi2)

    if HW_pad != HW:
        yr3 = yr3[:, :, :HW]
        yi3 = yi3[:, :, :HW]

    # Pure reshapes back to NCHW.
    return yr3.reshape(N, Cout, H, W), yi3.reshape(N, Cout, H, W)


def _reference(xr, xi, wr, wi):
    # Pure-JAX reference of the PyTorch forward for verification.
    ar = jnp.maximum(xr, 0.0)
    ai = jnp.maximum(xi, 0.0)
    wr2 = wr.reshape(wr.shape[0], wr.shape[1])  # (Cout, C)
    wi2 = wi.reshape(wi.shape[0], wi.shape[1])
    yr = jnp.einsum("nchw,oc->nohw", ar, wr2) - jnp.einsum("nchw,oc->nohw", ai, wi2)
    yi = jnp.einsum("nchw,oc->nohw", ai, wr2) + jnp.einsum("nchw,oc->nohw", ar, wi2)
    return yr, yi


if __name__ == "__main__":
    # Small shapes consistent with the module: nChannels=4, nOutChannels=8.
    N, C, H, W = 2, 4, 16, 16
    Cout = 8

    key = jax.random.PRNGKey(0)
    k_xr, k_xi, k_wr, k_wi = jax.random.split(key, 4)

    xr = jax.random.normal(k_xr, (N, C, H, W), dtype=jnp.float32)
    xi = jax.random.normal(k_xi, (N, C, H, W), dtype=jnp.float32)
    # PyTorch Conv2d weight shape: (Cout, C, 1, 1).
    wr = jax.random.normal(k_wr, (Cout, C, 1, 1), dtype=jnp.float32) * 0.1
    wi = jax.random.normal(k_wi, (Cout, C, 1, 1), dtype=jnp.float32) * 0.1

    yr, yi = jax.jit(transition_forward)(xr, xi, wr, wi)
    yr = jax.block_until_ready(yr)
    yi = jax.block_until_ready(yi)

    yr_ref, yi_ref = _reference(xr, xi, wr, wi)
    assert jnp.allclose(yr, yr_ref, atol=1e-5, rtol=1e-5)
    assert jnp.allclose(yi, yi_ref, atol=1e-5, rtol=1e-5)

    print("KERNEL_OK")
</pallas_src>

<mosaic_0001>
module attributes {stable_mosaic.version = 11 : i64} {
  func.func @_transition_kernel(%arg0: i32, %arg1: i32, %arg2: memref<1x4x256xf32, #tpu.memory_space<vmem>>, %arg3: memref<1x4x256xf32, #tpu.memory_space<vmem>>, %arg4: memref<8x4xf32, #tpu.memory_space<vmem>>, %arg5: memref<8x4xf32, #tpu.memory_space<vmem>>, %arg6: memref<1x8x256xf32, #tpu.memory_space<vmem>>, %arg7: memref<1x8x256xf32, #tpu.memory_space<vmem>>) attributes {dimension_semantics = [#tpu.dimension_semantics<parallel>, #tpu.dimension_semantics<parallel>], iteration_bounds = array<i64: 2, 1>, scalar_prefetch = 0 : i64, scratch_operands = 0 : i64, tpu.core_type = #tpu.core_type<tc>, window_params = [{transform_indices = @transform_0, window_bounds = array<i64: 1, 4, 256>}, {transform_indices = @transform_1, window_bounds = array<i64: 1, 4, 256>}, {pipeline_mode = #tpu.pipeline_mode<synchronous>, transform_indices = @transform_2, window_bounds = array<i64: 8, 4>}, {pipeline_mode = #tpu.pipeline_mode<synchronous>, transform_indices = @transform_3, window_bounds = array<i64: 8, 4>}, {transform_indices = @transform_4, window_bounds = array<i64: 1, 8, 256>}, {transform_indices = @transform_5, window_bounds = array<i64: 1, 8, 256>}]} {
    %c0 = arith.constant 0 : index
    %c0_0 = arith.constant 0 : index
    %0 = vector.load %arg4[%c0, %c0_0] : memref<8x4xf32, #tpu.memory_space<vmem>>, vector<8x4xf32>
    %c0_1 = arith.constant 0 : index
    %c0_2 = arith.constant 0 : index
    %1 = vector.load %arg5[%c0_1, %c0_2] : memref<8x4xf32, #tpu.memory_space<vmem>>, vector<8x4xf32>
    %c0_3 = arith.constant 0 : index
    %c0_4 = arith.constant 0 : index
    %c0_5 = arith.constant 0 : index
    %2 = vector.load %arg2[%c0_3, %c0_4, %c0_5] : memref<1x4x256xf32, #tpu.memory_space<vmem>>, vector<1x4x256xf32>
    %3 = vector.shape_cast %2 : vector<1x4x256xf32> to vector<4x256xf32>
    %cst = arith.constant 0.000000e+00 : f32
    %4 = vector.broadcast %cst : f32 to vector<4x256xf32>
    %5 = arith.maximumf %3, %4 : vector<4x256xf32>
    %c0_6 = arith.constant 0 : index
    %c0_7 = arith.constant 0 : index
    %c0_8 = arith.constant 0 : index
    %6 = vector.load %arg3[%c0_6, %c0_7, %c0_8] : memref<1x4x256xf32, #tpu.memory_space<vmem>>, vector<1x4x256xf32>
    %7 = vector.shape_cast %6 : vector<1x4x256xf32> to vector<4x256xf32>
    %cst_9 = arith.constant 0.000000e+00 : f32
    %8 = vector.broadcast %cst_9 : f32 to vector<4x256xf32>
    %9 = arith.maximumf %7, %8 : vector<4x256xf32>
    %cst_10 = arith.constant dense<0.000000e+00> : vector<8x256xf32>
    %10 = tpu.matmul %0, %5, %cst_10 {dimension_numbers = #tpu.dot_dimension_numbers<[1], [0], [0], [1], [0, 0, 1, 1], [], []>} : vector<8x4xf32>, vector<4x256xf32>, vector<8x256xf32> -> vector<8x256xf32>
    %cst_11 = arith.constant dense<0.000000e+00> : vector<8x256xf32>
    %11 = tpu.matmul %1, %9, %cst_11 {dimension_numbers = #tpu.dot_dimension_numbers<[1], [0], [0], [1], [0, 0, 1, 1], [], []>} : vector<8x4xf32>, vector<4x256xf32>, vector<8x256xf32> -> vector<8x256xf32>
    %12 = arith.subf %10, %11 : vector<8x256xf32>
    %c0_12 = arith.constant 0 : index
    %c0_13 = arith.constant 0 : index
    %c0_14 = arith.constant 0 : index
    %13 = vector.load %arg6[%c0_12, %c0_13, %c0_14] : memref<1x8x256xf32, #tpu.memory_space<vmem>>, vector<1x8x256xf32>
    %14 = vector.shape_cast %13 : vector<1x8x256xf32> to vector<8x256xf32>
    %15 = vector.shape_cast %12 : vector<8x256xf32> to vector<1x8x256xf32>
    tpu.vector_store %arg6[%c0_12, %c0_13, %c0_14], %15 {strides = array<i32>} : memref<1x8x256xf32, #tpu.memory_space<vmem>>, vector<1x8x256xf32>,
    %cst_15 = arith.constant dense<0.000000e+00> : vector<8x256xf32>
    %16 = tpu.matmul %0, %9, %cst_15 {dimension_numbers = #tpu.dot_dimension_numbers<[1], [0], [0], [1], [0, 0, 1, 1], [], []>} : vector<8x4xf32>, vector<4x256xf32>, vector<8x256xf32> -> vector<8x256xf32>
    %cst_16 = arith.constant dense<0.000000e+00> : vector<8x256xf32>
    %17 = tpu.matmul %1, %5, %cst_16 {dimension_numbers = #tpu.dot_dimension_numbers<[1], [0], [0], [1], [0, 0, 1, 1], [], []>} : vector<8x4xf32>, vector<4x256xf32>, vector<8x256xf32> -> vector<8x256xf32>
    %18 = arith.addf %16, %17 : vector<8x256xf32>
    %c0_17 = arith.constant 0 : index
    %c0_18 = arith.constant 0 : index
    %c0_19 = arith.constant 0 : index
    %19 = vector.load %arg7[%c0_17, %c0_18, %c0_19] : memref<1x8x256xf32, #tpu.memory_space<vmem>>, vector<1x8x256xf32>
    %20 = vector.shape_cast %19 : vector<1x8x256xf32> to vector<8x256xf32>
    %21 = vector.shape_cast %18 : vector<8x256xf32> to vector<1x8x256xf32>
    tpu.vector_store %arg7[%c0_17, %c0_18, %c0_19], %21 {strides = array<i32>} : memref<1x8x256xf32, #tpu.memory_space<vmem>>, vector<1x8x256xf32>,
    return
  }
  func.func @transform_0(%arg0: i32, %arg1: i32) -> (i32, i32, i32) {
    %c0_i32 = arith.constant 0 : i32
    %c0_i32_0 = arith.constant 0 : i32
    return %arg0, %c0_i32, %arg1 : i32, i32, i32
  }
  func.func @transform_1(%arg0: i32, %arg1: i32) -> (i32, i32, i32) {
    %c0_i32 = arith.constant 0 : i32
    %c0_i32_0 = arith.constant 0 : i32
    return %arg0, %c0_i32, %arg1 : i32, i32, i32
  }
  func.func @transform_2(%arg0: i32, %arg1: i32) -> (i32, i32) {
    %c0_i32 = arith.constant 0 : i32
    %c0_i32_0 = arith.constant 0 : i32
    %c0_i32_1 = arith.constant 0 : i32
    return %c0_i32, %c0_i32_0 : i32, i32
  }
  func.func @transform_3(%arg0: i32, %arg1: i32) -> (i32, i32) {
    %c0_i32 = arith.constant 0 : i32
    %c0_i32_0 = arith.constant 0 : i32
    %c0_i32_1 = arith.constant 0 : i32
    return %c0_i32, %c0_i32_0 : i32, i32
  }
  func.func @transform_4(%arg0: i32, %arg1: i32) -> (i32, i32, i32) {
    %c0_i32 = arith.constant 0 : i32
    %c0_i32_0 = arith.constant 0 : i32
    return %arg0, %c0_i32, %arg1 : i32, i32, i32
  }
  func.func @transform_5(%arg0: i32, %arg1: i32) -> (i32, i32, i32) {
    %c0_i32 = arith.constant 0 : i32
    %c0_i32_0 = arith.constant 0 : i32
    return %arg0, %c0_i32, %arg1 : i32, i32, i32
  }
}

</mosaic_0001>

<bundles_post_ra>
// kernel: transition_forward.1
= control target key start
LH: loop header
LB: loop body
LE: loop exit
PB: predicated region body
PF: predicated region fallthrough
CT: control target
= control target key end

     0   :  { %s908_s18 = smov 0   ;;  %s910_s19 = smov 0   ;;  %s961_s0 = inlined_call_operand.vmem [shape: f32[2,4,256], index: 0, kind: input, shape index: {}]   ;;  %s962_s1 = inlined_call_operand.vmem [shape: f32[2,4,256], index: 1, kind: input, shape index: {}]   ;;  %s963_s2 = inlined_call_operand.vmem [shape: f32[8,4], index: 2, kind: input, shape index: {}]   ;;  %s964_s3 = inlined_call_operand.vmem [shape: f32[8,4], index: 3, kind: input, shape index: {}]   ;;  %s965_s4 = inlined_call_operand.vmem [shape: f32[2,8,256], index: 4, kind: output, shape index: {0}]   ;;  %s966_s5 = inlined_call_operand.vmem [shape: f32[2,8,256], index: 5, kind: output, shape index: {1}]  }
   0x1   :  { %s912_s20 = smov 0  }
   0x2 LB: > { %s28_s21 = sadd.s32 1, %s871_s19  ;;  %p799_p0 = scmp.ge.s32.totalorder %s875_s20, 1  ;;  %s875_s20 = sphi %s912_s20, %s16_s20   ;;  %s871_s19 = sphi %s910_s19, %s968_s19   ;;  %s867_s18 = sphi %s908_s18, %s967_s18  }
   0x3   : > { %p30_p1 = scmp.ge.s32.totalorder %s28_s21, 2  ;;  %p230_p2 = scmp.lt.s32.totalorder %s875_s20, 3 }
   0x5   : > { %s970_s21 = smov (%p30_p1, %s28_s21), 0  ;;  %p231_p3 = pnand %p799_p0, %p230_p2 }
   0x6   : > { %p285_p4 = scmp.lt.s32.totalorder (!%p231_p3), %s867_s18, 1  ;;  %v877_v0 = vmov (!%p231_p3), 0.0   ;;  %vm336_vm0 = vcmask (!%p231_p3), 1043456   ;;  %v324_v6 = vld [vmem:[%s963_s2] sm:$0xff] (!%p231_p3)  ;;  %vm332_vm1 = vcmask (!%p231_p3), 31744  }
   0x7   : > { %234 = sbr.rel (%p231_p3) target bundleno = 246 (0xf6), region = 36  ;;  %405 = vmatprep.mubr.f32.mxu1 (!%p231_p3), %v877_v0  ;;  %560 = vmatprep.mubr.f32.mxu0 (!%p231_p3), %v877_v0  ;;  %v325_v7 = vld [vmem:[%s964_s3] sm:$0xff] (!%p231_p3) }
   0xe   : > { %s972_s18 = smov (!%p285_p4, %s867_s18), 1 }
   0xf   : > { %s822_s22 = sshll.u32 %s972_s18, 3  ;;  %s824_s8 = sshll.u32 %s972_s18, 4 }
  0x10   : > { %s292_s25 = scalar_lea.vmem %s961_s0, %s822_s22  ;;  %s302_s28 = scalar_lea.vmem %s962_s1, %s822_s22 }
  0x11   : > { %v326_v1 = vld [vmem:[%s292_s25] sm:$0xff]  ;;  %s312_s11 = scalar_lea.vmem %s965_s4, %s824_s8  ;;  %s322_s14 = scalar_lea.vmem %s966_s5, %s824_s8 }
  0x12   : > { %v328_v2 = vld [vmem:[%s302_s28] sm:$0xff]  ;;  %v327_v3 = vmax.f32 %v326_v1, 0.0 }
  0x13   : > { %v329_v4 = vmax.f32 %v328_v2, 0.0 }
  0x14   : > { %v331_v5 = vcombine.high %v327_v3, %v327_v3 }
  0x15   : > { %v413_v8 = vcombine.high %v329_v4, %v329_v4 }
  0x16   : > { %808 = vmatprep.subr.msk.mxu1 %vm336_vm0, %v331_v5  ;;  %814 = vmatprep.subr.msk.mxu0 %vm336_vm0, %v331_v5 }
  0x17   : > { %809 = vmatpush1.msk.msra.mxu1 %vm336_vm0, %v327_v3  ;;  %815 = vmatpush1.msk.msra.mxu0 %vm336_vm0, %v327_v3 }
  0x18   : > { %810 = vmatmul.mubr.msk.f32.vlgmr.msra.gmra.mrb[0].mxu1 %vm332_vm1, %v324_v6  ;;  %816 = vmatmul.mubr.msk.f32.vlgmr.msra.gmra.mrb[0].mxu0 %vm332_vm1, %v325_v7 }
  0x19   : > { %817 = vmatprep.subr.msk.mxu0 %vm336_vm0, %v413_v8  ;;  %811 = vmatprep.subr.msk.mxu1 %vm336_vm0, %v413_v8 }
  0x1a   : > { %818 = vmatpush1.msk.msra.mxu0 %vm336_vm0, %v329_v4  ;;  %812 = vmatpush1.msk.msra.mxu1 %vm336_vm0, %v329_v4 }
  0x1b   : > { %485 = vmatprep.mubr.f32.mxu1 %v877_v0  ;;  %631 = vmatprep.mubr.f32.mxu0 %v877_v0 }
  0x1c   : > { %813 = vmatmul.mubr.msk.f32.vlgmr.msra.gmra.mrb[2].mxu1 %vm332_vm1, %v325_v7 }
  0x20   : > { %819 = vmatmul.mubr.msk.f32.vlgmr.msra.gmra.mrb[0].mxu0 %vm332_vm1, %v324_v6 }
  0xeb   : > { %v407_v9 = vpop.f32.mrb[0].mxu1 }
  0xec   : > { %v409_v10 = vpop.f32.mrb[1].mxu1 }
  0xef   : > { %v487_v11 = vpop.f32.mrb[2].mxu1 }
  0xf0   : > { %v492_v12 = vsub.f32 %v407_v9, %v487_v11  ;;  %v489_v13 = vpop.f32.mrb[3].mxu1 }
  0xf1   : > { %v493_v14 = vsub.f32 %v409_v10, %v489_v13 }
  0xf2   : > { %494 = vst [vmem:[%s312_s11] sm:$0xff] %v492_v12 }
  0xf3   : > { %495 = vst [vmem:[%s312_s11 + $0x8] sm:$0xff] %v493_v14  ;;  %v633_v15 = vpop.f32.mrb[0].mxu0 }
  0xf4   : > { %638 = vst [vmem:[%s322_s14] sm:$0xff] %v633_v15  ;;  %v635_v16 = vpop.f32.mrb[1].mxu0 }
  0xf5   : > { %639 = vst [vmem:[%s322_s14 + $0x8] sm:$0xff] %v635_v16 }
  0xf6 PF: > { %s16_s20 = sadd.s32 1, %s875_s20   ;;  %s967_s18 = smov %s871_s19 }
  0xf7   : > { %p13_p5 = scmp.ge.s32.totalorder %s16_s20, 4   ;;  %s968_s19 = smov %s970_s21 }
  0xf9   :  { %15 = sbr.rel (!%p13_p5) target bundleno = 2 (0x2), region = 81 }

</bundles_post_ra>
